<compile_context>
chip_gen: v6e
topology: v6e:2x2x1
jax: 0.10.0
libtpu: 0.0.40
codegen_flags: <defaults>
</compile_context>

<pallas_src>
import jax
import jax.numpy as jnp
from jax.experimental import pallas as pl
from jax.experimental.pallas import tpu as pltpu


# ----------------------------- kernel ---------------------------------------

def _siamese_kernel(xf_ref, xk_ref, w1_ref, b1_ref, w2_ref, b2_ref,
                    of_ref, ok_ref):
    """Both siamese branches of fc2(relu(fc1(x))) for one batch tile."""
    w1 = w1_ref[...]          # bf16 (d_in,  h_dim)   -- VMEM resident
    w2 = w2_ref[...]          # bf16 (h_dim, d_out_p) -- VMEM resident
    b1 = b1_ref[...]          # f32  (1, h_dim)
    b2 = b2_ref[...]          # f32  (1, d_out_p)

    def branch(x_ref, o_ref):
        x = x_ref[...].astype(jnp.bfloat16)                 # in-vreg cast
        h = jnp.dot(x, w1, preferred_element_type=jnp.float32)
        h = jnp.maximum(h + b1, 0.0)                        # f32 bias + ReLU
        y = jnp.dot(h.astype(jnp.bfloat16), w2,
                    preferred_element_type=jnp.float32)
        o_ref[...] = (y + b2).astype(o_ref.dtype)

    branch(xf_ref, of_ref)
    branch(xk_ref, ok_ref)


# ----------------------------- helpers ---------------------------------------

def _round_up(x, m):
    return (x + m - 1) // m * m


def _cdiv(a, b):
    return (a + b - 1) // b


def _pick_tile_b(rows):
    """Batch tile: multiple of 8 (f32 x blocks). Single grid step for small
    batches; ~2048-row tiles for large batches (keeps DMA pipelining and lets
    v7x shard steps across its 2 TensorCores without paying fixed per-step
    overhead at tiny batch)."""
    cap = 2048
    rows8 = max(8, _round_up(rows, 8))
    if rows8 <= cap:
        return rows8
    n_tiles = _cdiv(rows8, cap)
    return _round_up(_cdiv(rows8, n_tiles), 8)


def _vmem_limit_bytes(tile_b, d_in, h_dim, d_out_p):
    """Generation-aware scoped-VMEM budget."""
    need = (2 * 2 * tile_b * d_in * 4            # two f32 x tiles, double-buffered
            + 2 * 2 * tile_b * d_out_p * 4       # two f32 out tiles, double-buffered
            + 2 * (d_in * h_dim + h_dim * d_out_p) * 2   # bf16 weights (2 bufs)
            + 2 * (h_dim + d_out_p) * 4)                 # f32 biases (2 bufs)
    try:
        info = pltpu.get_tpu_info()
        vmem_cap = int(getattr(info, "vmem_capacity_bytes", 64 << 20))
    except Exception:
        vmem_cap = 64 << 20                      # conservative (v7x per-TC)
    return int(min(int(0.75 * vmem_cap), max(32 << 20, 2 * need)))


# ----------------------------- wrapper ---------------------------------------

def prepare_params(params):
    """One-time weight prep (cache the result; do NOT redo this per call)."""
    w1, b1, w2, b2 = params                      # x @ W layout
    d_in, h_dim = w1.shape
    d_out = w2.shape[1]
    d_out_p = _round_up(d_out, 128)              # lane-dense output stores
    return {
        "w1": w1.astype(jnp.bfloat16),
        "b1": jnp.asarray(b1, jnp.float32).reshape(1, h_dim),
        "w2": jnp.pad(w2, ((0, 0), (0, d_out_p - d_out))).astype(jnp.bfloat16),
        "b2": jnp.pad(jnp.asarray(b2, jnp.float32).reshape(1, d_out),
                      ((0, 0), (0, d_out_p - d_out))),
        "d_out": int(d_out),
    }


def siamese_forward(emb_full, emb_key, prepared):
    """Pallas equivalent of SiameseNetwork.forward -> (out_full, out_key)."""
    w1, b1 = prepared["w1"], prepared["b1"]
    w2, b2 = prepared["w2"], prepared["b2"]
    d_out = prepared["d_out"]

    B, d_in = emb_full.shape
    h_dim = w1.shape[1]
    d_out_p = w2.shape[1]

    xf = emb_full.astype(jnp.float32)            # kernel casts to bf16 in-vreg
    xk = emb_key.astype(jnp.float32)

    tile_b = _pick_tile_b(B)
    rows_p = _round_up(B, tile_b)
    if rows_p != B:
        xf = jnp.pad(xf, ((0, rows_p - B), (0, 0)))
        xk = jnp.pad(xk, ((0, rows_p - B), (0, 0)))

    grid = (rows_p // tile_b,)
    vmem_limit = _vmem_limit_bytes(tile_b, d_in, h_dim, d_out_p)

    out_full, out_key = pl.pallas_call(
        _siamese_kernel,
        out_shape=(jax.ShapeDtypeStruct((rows_p, d_out_p), jnp.float32),
                   jax.ShapeDtypeStruct((rows_p, d_out_p), jnp.float32)),
        grid_spec=pltpu.PrefetchScalarGridSpec(
            num_scalar_prefetch=0,
            grid=grid,
            in_specs=[
                pl.BlockSpec((tile_b, d_in),   lambda i: (i, 0)),   # emb_full tile
                pl.BlockSpec((tile_b, d_in),   lambda i: (i, 0)),   # emb_key tile
                pl.BlockSpec((d_in, h_dim),    lambda i: (0, 0)),   # W1 (resident)
                pl.BlockSpec((1, h_dim),       lambda i: (0, 0)),   # b1
                pl.BlockSpec((h_dim, d_out_p), lambda i: (0, 0)),   # W2 (resident)
                pl.BlockSpec((1, d_out_p),     lambda i: (0, 0)),   # b2
            ],
            out_specs=[
                pl.BlockSpec((tile_b, d_out_p), lambda i: (i, 0)),  # out_full tile
                pl.BlockSpec((tile_b, d_out_p), lambda i: (i, 0)),  # out_key tile
            ],
        ),
        compiler_params=pltpu.CompilerParams(
            dimension_semantics=("parallel",),
            vmem_limit_bytes=vmem_limit),
    )(xf, xk, w1, b1, w2, b2)

    return out_full[:B, :d_out], out_key[:B, :d_out]


# ----------------------------- demo / check ----------------------------------

def init_params(key, input_dim, hidden_dim, output_dim):
    """Deterministic init mimicking nn.Linear's U(-1/sqrt(fan_in), 1/sqrt(fan_in))."""
    k1, k2, k3, k4 = jax.random.split(key, 4)
    bound1 = 1.0 / (input_dim ** 0.5)
    bound2 = 1.0 / (hidden_dim ** 0.5)
    w1 = jax.random.uniform(k1, (input_dim, hidden_dim), jnp.float32,
                            minval=-bound1, maxval=bound1)
    b1 = jax.random.uniform(k2, (1, hidden_dim), jnp.float32,
                            minval=-bound1, maxval=bound1)
    w2 = jax.random.uniform(k3, (hidden_dim, output_dim), jnp.float32,
                            minval=-bound2, maxval=bound2)
    b2 = jax.random.uniform(k4, (1, output_dim), jnp.float32,
                            minval=-bound2, maxval=bound2)
    return w1, b1, w2, b2


if __name__ == "__main__":
    input_dim, hidden_dim, output_dim = 32, 64, 32
    batch = 8

    key = jax.random.PRNGKey(0)
    k_p, k_full, k_key = jax.random.split(key, 3)

    params = init_params(k_p, input_dim, hidden_dim, output_dim)
    emb_full = jax.random.normal(k_full, (batch, input_dim), jnp.float32)
    emb_key = jax.random.normal(k_key, (batch, input_dim), jnp.float32)

    # One-time weight prep, then a jitted forward closing over the prepared
    # weights (so per-call cost is just the fused kernel).
    prepared = prepare_params(params)
    fwd = jax.jit(lambda a, b: siamese_forward(a, b, prepared))

    out_full, out_key = fwd(emb_full, emb_key)
    jax.block_until_ready((out_full, out_key))

    w1, b1, w2, b2 = params

    def ref_once_bf16(x):
        # Mirrors the kernel math (bf16 MXU operands, f32 accumulate/epilogue).
        h = jnp.dot(x.astype(jnp.bfloat16), w1.astype(jnp.bfloat16),
                    preferred_element_type=jnp.float32) + b1
        h = jnp.maximum(h, 0.0)
        return jnp.dot(h.astype(jnp.bfloat16), w2.astype(jnp.bfloat16),
                       preferred_element_type=jnp.float32) + b2

    def ref_once_f32(x):
        # Original module semantics in full f32.
        return jnp.maximum(x @ w1 + b1, 0.0) @ w2 + b2

    assert out_full.shape == (batch, output_dim)
    assert out_key.shape == (batch, output_dim)
    # Tight check against the bf16-mirrored reference.
    assert jnp.allclose(out_full, ref_once_bf16(emb_full), atol=5e-3, rtol=5e-3)
    assert jnp.allclose(out_key, ref_once_bf16(emb_key), atol=5e-3, rtol=5e-3)
    # Looser semantic check against the pure-f32 module reference.
    assert jnp.allclose(out_full, ref_once_f32(emb_full), atol=6e-2, rtol=6e-2)
    assert jnp.allclose(out_key, ref_once_f32(emb_key), atol=6e-2, rtol=6e-2)

    print("KERNEL_OK")
</pallas_src>

<mosaic_0001>
module attributes {stable_mosaic.version = 11 : i64} {
  func.func @_siamese_kernel(%arg0: i32, %arg1: memref<8x32xf32, #tpu.memory_space<vmem>>, %arg2: memref<8x32xf32, #tpu.memory_space<vmem>>, %arg3: memref<32x64xbf16, #tpu.memory_space<vmem>>, %arg4: memref<1x64xf32, #tpu.memory_space<vmem>>, %arg5: memref<64x128xbf16, #tpu.memory_space<vmem>>, %arg6: memref<1x128xf32, #tpu.memory_space<vmem>>, %arg7: memref<8x128xf32, #tpu.memory_space<vmem>>, %arg8: memref<8x128xf32, #tpu.memory_space<vmem>>) attributes {dimension_semantics = [#tpu.dimension_semantics<parallel>], iteration_bounds = array<i64: 1>, scalar_prefetch = 0 : i64, scratch_operands = 0 : i64, tpu.core_type = #tpu.core_type<tc>, window_params = [{transform_indices = @transform_0, window_bounds = array<i64: 8, 32>}, {transform_indices = @transform_1, window_bounds = array<i64: 8, 32>}, {pipeline_mode = #tpu.pipeline_mode<synchronous>, transform_indices = @transform_2, window_bounds = array<i64: 32, 64>}, {pipeline_mode = #tpu.pipeline_mode<synchronous>, transform_indices = @transform_3, window_bounds = array<i64: 1, 64>}, {pipeline_mode = #tpu.pipeline_mode<synchronous>, transform_indices = @transform_4, window_bounds = array<i64: 64, 128>}, {pipeline_mode = #tpu.pipeline_mode<synchronous>, transform_indices = @transform_5, window_bounds = array<i64: 1, 128>}, {transform_indices = @transform_6, window_bounds = array<i64: 8, 128>}, {transform_indices = @transform_7, window_bounds = array<i64: 8, 128>}]} {
    %c0 = arith.constant 0 : index
    %c0_0 = arith.constant 0 : index
    %0 = vector.load %arg3[%c0, %c0_0] : memref<32x64xbf16, #tpu.memory_space<vmem>>, vector<32x64xbf16>
    %c0_1 = arith.constant 0 : index
    %c0_2 = arith.constant 0 : index
    %1 = vector.load %arg5[%c0_1, %c0_2] : memref<64x128xbf16, #tpu.memory_space<vmem>>, vector<64x128xbf16>
    %c0_3 = arith.constant 0 : index
    %c0_4 = arith.constant 0 : index
    %2 = vector.load %arg4[%c0_3, %c0_4] : memref<1x64xf32, #tpu.memory_space<vmem>>, vector<1x64xf32>
    %c0_5 = arith.constant 0 : index
    %c0_6 = arith.constant 0 : index
    %3 = vector.load %arg6[%c0_5, %c0_6] : memref<1x128xf32, #tpu.memory_space<vmem>>, vector<1x128xf32>
    %c0_7 = arith.constant 0 : index
    %c0_8 = arith.constant 0 : index
    %4 = vector.load %arg1[%c0_7, %c0_8] : memref<8x32xf32, #tpu.memory_space<vmem>>, vector<8x32xf32>
    %5 = arith.truncf %4 : vector<8x32xf32> to vector<8x32xbf16>
    %cst = arith.constant dense<0.000000e+00> : vector<8x64xf32>
    %6 = tpu.matmul %5, %0, %cst {dimension_numbers = #tpu.dot_dimension_numbers<[1], [0], [0], [1], [0, 0, 1, 1], [], []>} : vector<8x32xbf16>, vector<32x64xbf16>, vector<8x64xf32> -> vector<8x64xf32>
    %7 = vector.broadcast %2 : vector<1x64xf32> to vector<8x64xf32>
    %8 = arith.addf %6, %7 : vector<8x64xf32>
    %cst_9 = arith.constant 0.000000e+00 : f32
    %9 = vector.broadcast %cst_9 : f32 to vector<8x64xf32>
    %10 = arith.maximumf %8, %9 : vector<8x64xf32>
    %11 = arith.truncf %10 : vector<8x64xf32> to vector<8x64xbf16>
    %cst_10 = arith.constant dense<0.000000e+00> : vector<8x128xf32>
    %12 = tpu.matmul %11, %1, %cst_10 {dimension_numbers = #tpu.dot_dimension_numbers<[1], [0], [0], [1], [0, 0, 1, 1], [], []>} : vector<8x64xbf16>, vector<64x128xbf16>, vector<8x128xf32> -> vector<8x128xf32>
    %13 = vector.broadcast %3 : vector<1x128xf32> to vector<8x128xf32>
    %14 = arith.addf %12, %13 : vector<8x128xf32>
    %c0_11 = arith.constant 0 : index
    %c0_12 = arith.constant 0 : index
    %15 = vector.load %arg7[%c0_11, %c0_12] : memref<8x128xf32, #tpu.memory_space<vmem>>, vector<8x128xf32>
    tpu.vector_store %arg7[%c0_11, %c0_12], %14 {strides = array<i32>} : memref<8x128xf32, #tpu.memory_space<vmem>>, vector<8x128xf32>,
    %c0_13 = arith.constant 0 : index
    %c0_14 = arith.constant 0 : index
    %16 = vector.load %arg2[%c0_13, %c0_14] : memref<8x32xf32, #tpu.memory_space<vmem>>, vector<8x32xf32>
    %17 = arith.truncf %16 : vector<8x32xf32> to vector<8x32xbf16>
    %cst_15 = arith.constant dense<0.000000e+00> : vector<8x64xf32>
    %18 = tpu.matmul %17, %0, %cst_15 {dimension_numbers = #tpu.dot_dimension_numbers<[1], [0], [0], [1], [0, 0, 1, 1], [], []>} : vector<8x32xbf16>, vector<32x64xbf16>, vector<8x64xf32> -> vector<8x64xf32>
    %19 = vector.broadcast %2 : vector<1x64xf32> to vector<8x64xf32>
    %20 = arith.addf %18, %19 : vector<8x64xf32>
    %cst_16 = arith.constant 0.000000e+00 : f32
    %21 = vector.broadcast %cst_16 : f32 to vector<8x64xf32>
    %22 = arith.maximumf %20, %21 : vector<8x64xf32>
    %23 = arith.truncf %22 : vector<8x64xf32> to vector<8x64xbf16>
    %cst_17 = arith.constant dense<0.000000e+00> : vector<8x128xf32>
    %24 = tpu.matmul %23, %1, %cst_17 {dimension_numbers = #tpu.dot_dimension_numbers<[1], [0], [0], [1], [0, 0, 1, 1], [], []>} : vector<8x64xbf16>, vector<64x128xbf16>, vector<8x128xf32> -> vector<8x128xf32>
    %25 = vector.broadcast %3 : vector<1x128xf32> to vector<8x128xf32>
    %26 = arith.addf %24, %25 : vector<8x128xf32>
    %c0_18 = arith.constant 0 : index
    %c0_19 = arith.constant 0 : index
    %27 = vector.load %arg8[%c0_18, %c0_19] : memref<8x128xf32, #tpu.memory_space<vmem>>, vector<8x128xf32>
    tpu.vector_store %arg8[%c0_18, %c0_19], %26 {strides = array<i32>} : memref<8x128xf32, #tpu.memory_space<vmem>>, vector<8x128xf32>,
    return
  }
  func.func @transform_0(%arg0: i32) -> (i32, i32) {
    %c0_i32 = arith.constant 0 : i32
    %c0_i32_0 = arith.constant 0 : i32
    return %arg0, %c0_i32 : i32, i32
  }
  func.func @transform_1(%arg0: i32) -> (i32, i32) {
    %c0_i32 = arith.constant 0 : i32
    %c0_i32_0 = arith.constant 0 : i32
    return %arg0, %c0_i32 : i32, i32
  }
  func.func @transform_2(%arg0: i32) -> (i32, i32) {
    %c0_i32 = arith.constant 0 : i32
    %c0_i32_0 = arith.constant 0 : i32
    %c0_i32_1 = arith.constant 0 : i32
    return %c0_i32, %c0_i32_0 : i32, i32
  }
  func.func @transform_3(%arg0: i32) -> (i32, i32) {
    %c0_i32 = arith.constant 0 : i32
    %c0_i32_0 = arith.constant 0 : i32
    %c0_i32_1 = arith.constant 0 : i32
    return %c0_i32, %c0_i32_0 : i32, i32
  }
  func.func @transform_4(%arg0: i32) -> (i32, i32) {
    %c0_i32 = arith.constant 0 : i32
    %c0_i32_0 = arith.constant 0 : i32
    %c0_i32_1 = arith.constant 0 : i32
    return %c0_i32, %c0_i32_0 : i32, i32
  }
  func.func @transform_5(%arg0: i32) -> (i32, i32) {
    %c0_i32 = arith.constant 0 : i32
    %c0_i32_0 = arith.constant 0 : i32
    %c0_i32_1 = arith.constant 0 : i32
    return %c0_i32, %c0_i32_0 : i32, i32
  }
  func.func @transform_6(%arg0: i32) -> (i32, i32) {
    %c0_i32 = arith.constant 0 : i32
    %c0_i32_0 = arith.constant 0 : i32
    return %arg0, %c0_i32 : i32, i32
  }
  func.func @transform_7(%arg0: i32) -> (i32, i32) {
    %c0_i32 = arith.constant 0 : i32
    %c0_i32_0 = arith.constant 0 : i32
    return %arg0, %c0_i32 : i32, i32
  }
}

</mosaic_0001>

<bundles_post_ra>
// kernel: _lambda_.1
= control target key start
LH: loop header
LB: loop body
LE: loop exit
PB: predicated region body
PF: predicated region fallthrough
CT: control target
= control target key end

     0   :  { %13 = vsyncpa [#allocation3], 0  ;;  %s648_s0 = inlined_call_operand.hbm [shape: f32[8,32], index: 0, kind: input, shape index: {}]   ;;  %s649_s1 = inlined_call_operand.hbm [shape: f32[8,32], index: 1, kind: input, shape index: {}]   ;;  %s650_s2 = inlined_call_operand.hbm [shape: bf16[32,64], index: 2, kind: input, shape index: {}]   ;;  %s651_s3 = inlined_call_operand.vmem [shape: f32[1,64], index: 3, kind: input, shape index: {}]   ;;  %s652_s4 = inlined_call_operand.hbm [shape: bf16[64,128], index: 4, kind: input, shape index: {}]   ;;  %s653_s5 = inlined_call_operand.vmem [shape: f32[1,128], index: 5, kind: input, shape index: {}]   ;;  %s654_s6 = inlined_call_operand.hbm [shape: f32[8,128], index: 6, kind: output, shape index: {0}]   ;;  %s655_s7 = inlined_call_operand.hbm [shape: f32[8,128], index: 7, kind: output, shape index: {1}]  }
   0x1   :  { %14 = vsyncpa [#allocation6], 0 }
   0x2   :  { %15 = vsyncpa [#allocation9], 0 }
   0x3   :  { %16 = vsyncpa [#allocation4], 0 }
   0x4   :  { %17 = vsyncpa [#allocation12], 0  ;;  %s570_s24 = smov [#allocation5]   ;;  %s571_s26 = smov [#allocation2]  }
   0x5   :  { %s34_s25 = sshll.u32 %s570_s24, 4  ;;  %s24_s27 = sshll.u32 %s571_s26, 4  ;;  %s35_s25 = int_to_ptr.vmem [resolvable:$true] %s34_s25  ;;  %s25_s27 = int_to_ptr.vmem [resolvable:$true] %s24_s27 }
   0x6   :  { %s448_s28 = scalar_lea.vmem %s35_s25, 128  ;;  %p453_p1 = scmp.lt.s32.totalorder %s35_s25, %s35_s25 }
   0x7   :  { %p449_p0 = scmp.ne.s32.totalorder %s35_s25, %s448_s28  ;;  %p454_p2 = scmp.lt.s32.totalorder %s448_s28, %s448_s28 }
   0x9   :  { %p455_p3 = por %p454_p2, %p453_p1 }
   0xb   :  { %p456_p4 = pnand %p455_p3, %p449_p0 }
   0xd   :  { %459 = shalt.err (!%p456_p4)
}
   0xe   :  { %37 = dma.hbm_to_vmem [thread:$0]  %s649_s1, 128, %s35_s25, [#allocation6]  }
   0xf   :  { %s468_s8 = scalar_lea.vmem %s25_s27, 128  ;;  %p473_p6 = scmp.lt.s32.totalorder %s25_s27, %s25_s27 }
  0x10   :  { %p469_p5 = scmp.ne.s32.totalorder %s25_s27, %s468_s8  ;;  %p474_p7 = scmp.lt.s32.totalorder %s468_s8, %s468_s8 }
  0x12   :  { %p475_p8 = por %p474_p7, %p473_p6 }
  0x14   :  { %p476_p9 = pnand %p475_p8, %p469_p5 }
  0x16   :  { %479 = shalt.err (!%p476_p9)
}
  0x17   :  { %27 = dma.hbm_to_vmem [thread:$0]  %s648_s0, 128, %s25_s27, [#allocation3]  }
  0x18   :  { %s572_s11 = smov [#allocation7]  }
  0x19   :  { %s43_s12 = sshll.u32 %s572_s11, 4  ;;  %s44_s12 = int_to_ptr.vmem [resolvable:$true] %s43_s12 }
  0x1a   :  { %s488_s13 = scalar_lea.vmem %s44_s12, 256  ;;  %p493_p11 = scmp.lt.s32.totalorder %s44_s12, %s44_s12 }
  0x1b   :  { %p489_p10 = scmp.ne.s32.totalorder %s44_s12, %s488_s13  ;;  %p494_p12 = scmp.lt.s32.totalorder %s488_s13, %s488_s13 }
  0x1d   :  { %p495_p13 = por %p494_p12, %p493_p11 }
  0x1f   :  { %p496_p0 = pnand %p495_p13, %p489_p10 }
  0x21   :  { %499 = shalt.err (!%p496_p0)
}
  0x22   :  { %s573_s1 = smov 64   ;;  %s574_s14 = smov 4  }
  0x23   :  { %49 = dma.hbm_to_vmem [thread:$0]  %s650_s2, 256, %s44_s12, [#allocation6], %s573_s1, %s573_s1, %s574_s14  }
  0x24   :  { %s575_s17 = smov [#allocation8]  }
  0x25   :  { %s57_s18 = sshll.u32 %s575_s17, 4  ;;  %s58_s18 = int_to_ptr.vmem [resolvable:$true] %s57_s18 }
  0x26   :  { %s508_s0 = scalar_lea.vmem %s58_s18, 512  ;;  %p513_p2 = scmp.lt.s32.totalorder %s58_s18, %s58_s18 }
  0x27   :  { %p509_p1 = scmp.ne.s32.totalorder %s58_s18, %s508_s0  ;;  %p514_p3 = scmp.lt.s32.totalorder %s508_s0, %s508_s0 }
  0x29   :  { %p515_p4 = por %p514_p3, %p513_p2 }
  0x2b   :  { %p516_p5 = pnand %p515_p4, %p509_p1 }
  0x2d   :  { %519 = shalt.err (!%p516_p5)
}
  0x2e   :  { %63 = dma.hbm_to_vmem [thread:$0]  %s652_s4, 512, %s58_s18, [#allocation9], %s573_s1, %s573_s1, %s574_s14  }
  0x2f   :  { %560 = dma.done.wait [#allocation3], 128  }
  0x30   :  { %561 = vsyncadd [#allocation3], 4294967168 }
  0x31   :  { %562 = dma.done.wait [#allocation6], 384  }
  0x32   :  { %563 = vsyncadd [#allocation6], 4294966912 }
  0x33   :  { %564 = dma.done.wait [#allocation9], 512  }
  0x34   :  { %565 = vsyncadd [#allocation9], 4294966784  ;;  %v576_v0 = vmov 0.0   ;;  %vm577_vm0 = vmmov 0   ;;  %v434_v1 = vld [vmem:[#allocation7 + $0x8] sm:$0xff]   ;;  %v435_v2 = vld [vmem:[#allocation7] sm:$0xff]  }
  0x35   :  { %384 = vmatprep.subr.bf16.mxu1 %v576_v0  ;;  %404 = vmatprep.subr.bf16.mxu0 %v576_v0  ;;  %v93_v3 = vld [vmem:[#allocation2] sm:$0xff]  ;;  %v234_v4 = vld [vmem:[#allocation5] sm:$0xff]  ;;  %vm113_vm1 = vcmask 261120   ;;  %v436_v7 = vld [vmem:[#allocation8 + $0x18] sm:$0xff]   ;;  %vm189_vm2 = vcmask 523264   ;;  %s579_s24 = smov [#allocation11]  }
  0x36   :  { %388 = vmatprep.mubr.msk.bf16.mxu1 %vm577_vm0, %v576_v0  ;;  %408 = vmatprep.mubr.msk.bf16.mxu0 %vm577_vm0, %v576_v0  ;;  %v94_v5 = vpack.c.bf16 %v93_v3, %v93_v3  ;;  %v235_v6 = vpack.c.bf16 %v234_v4, %v234_v4  ;;  %v437_v8 = vld [vmem:[#allocation8 + $0x10] sm:$0xff]   ;;  %v438_v9 = vld [vmem:[#allocation8 + $0x8] sm:$0xff]   ;;  %v439_v10 = vld [vmem:[#allocation8] sm:$0xff]   ;;  %s341_s25 = sshll.u32 %s579_s24, 4  ;;  %s342_s25 = int_to_ptr.vmem [resolvable:$true] %s341_s25 }
  0x37   :  { %385 = vmatpush3.bf16.msra.mxu1 %v434_v1  ;;  %405 = vmatpush3.bf16.msra.mxu0 %v434_v1  ;;  %v356_v11 = vld [vmem:[%s651_s3] ss:$0 sm:$0xff]  ;;  %s578_s3 = smov [#allocation10]  }
  0x38   :  { %386 = vmatprep.subr.bf16.mxu1 %v576_v0  ;;  %406 = vmatprep.subr.bf16.mxu0 %v576_v0  ;;  %v360_v26 = vld [vmem:[%s653_s5] ss:$0 sm:$0xff]  ;;  %s331_s23 = sshll.u32 %s578_s3, 4  ;;  %s332_s23 = int_to_ptr.vmem [resolvable:$true] %s331_s23 }
  0x39   :  { %s520_s26 = scalar_lea.vmem %s332_s23, 128  ;;  %p525_p7 = scmp.lt.s32.totalorder %s332_s23, %s332_s23 }
  0x3a   :  { %p521_p6 = scmp.ne.s32.totalorder %s332_s23, %s520_s26  ;;  %p526_p8 = scmp.lt.s32.totalorder %s520_s26, %s520_s26 }
  0x3b   :  { %387 = vmatpush3.bf16.msra.mxu1 %v435_v2  ;;  %407 = vmatpush3.bf16.msra.mxu0 %v435_v2 }
  0x3c   :  { %392 = vmatprep.subr.bf16.mxu1 %v576_v0  ;;  %412 = vmatprep.subr.bf16.mxu0 %v576_v0  ;;  %p527_p9 = por %p526_p8, %p525_p7 }
  0x3e   :  { %389 = vmatmul.mubr.msk.bf16.vlgmr.msra.gmra.mxu1 %vm113_vm1, %v94_v5  ;;  %409 = vmatmul.mubr.msk.bf16.vlgmr.msra.gmra.mxu0 %vm113_vm1, %v235_v6  ;;  %p528_p10 = pnand %p527_p9, %p521_p6 }
  0x3f   :  { %393 = vmatpush3.bf16.msra.mxu1 %v436_v7  ;;  %413 = vmatpush3.bf16.msra.mxu0 %v436_v7 }
  0x40   :  { %394 = vmatprep.subr.bf16.mxu1 %v576_v0  ;;  %414 = vmatprep.subr.bf16.mxu0 %v576_v0 }
  0x41   :  { %400 = vmatprep.mubr.msk.bf16.mxu1 %vm577_vm0, %v576_v0  ;;  %420 = vmatprep.mubr.msk.bf16.mxu0 %vm577_vm0, %v576_v0 }
  0x43   :  { %395 = vmatpush3.bf16.msra.mxu1 %v437_v8  ;;  %415 = vmatpush3.bf16.msra.mxu0 %v437_v8 }
  0x44   :  { %396 = vmatprep.subr.bf16.mxu1 %v576_v0  ;;  %416 = vmatprep.subr.bf16.mxu0 %v576_v0 }
  0x47   :  { %397 = vmatpush3.bf16.msra.mxu1 %v438_v9  ;;  %417 = vmatpush3.bf16.msra.mxu0 %v438_v9 }
  0x48   :  { %398 = vmatprep.subr.bf16.mxu1 %v576_v0  ;;  %418 = vmatprep.subr.bf16.mxu0 %v576_v0 }
  0x4b   :  { %399 = vmatpush3.bf16.msra.mxu1 %v439_v10  ;;  %419 = vmatpush3.bf16.msra.mxu0 %v439_v10 }
  0xfe   :  { %v151_v12 = vpop.f32.mrf.mxu1  ;;  %v273_v13 = vpop.f32.mrf.mxu0 }
  0xff   :  { %v152_v14 = vadd.f32 %v356_v11, %v151_v12  ;;  %v274_v15 = vadd.f32 %v356_v11, %v273_v13 }
 0x100   :  { %v390_v16 = vpop.f32.mrf.mxu1  ;;  %v410_v17 = vpop.f32.mrf.mxu0 }
 0x101   :  { %v157_v18 = vmax.f32 %v152_v14, 0.0  ;;  %v279_v19 = vmax.f32 %v274_v15, 0.0 }
 0x102   :  { %v154_v20 = vpop.f32.mrf.mxu1  ;;  %v276_v21 = vpop.f32.mrf.mxu0 }
 0x103   :  { %v158_v22 = vpack.c.bf16 %v157_v18, %v157_v18  ;;  %v280_v23 = vpack.c.bf16 %v279_v19, %v279_v19 }
 0x104   :  { %v391_v24 = vpop.f32.mrf.mxu1  ;;  %v411_v25 = vpop.f32.mrf.mxu0 }
 0x105   :  { %401 = vmatmul.mubr.msk.bf16.vlgmr.msra.gmra.mxu1 %vm189_vm2, %v158_v22  ;;  %421 = vmatmul.mubr.msk.bf16.vlgmr.msra.gmra.mxu0 %vm189_vm2, %v280_v23 }
 0x1c5   :  { %v227_v27 = vpop.f32.mrf.mxu1  ;;  %v318_v28 = vpop.f32.mrf.mxu0 }
 0x1c6   :  { %v228_v29 = vadd.f32 %v360_v26, %v227_v27  ;;  %v319_v30 = vadd.f32 %v360_v26, %v318_v28 }
 0x1c7   :  { %v402_v31 = vpop.f32.mrf.mxu1  ;;  %v422_v32 = vpop.f32.mrf.mxu0 }
 0x1c8   :  { %233 = vst [vmem:[#allocation10] sm:$0xff] %v228_v29  ;;  %324 = vst [vmem:[#allocation11] sm:$0xff] %v319_v30 }
 0x1c9   :  { %v230_v33 = vpop.f32.mrf.mxu1  ;;  %v321_v34 = vpop.f32.mrf.mxu0 }
 0x1ca   :  { %531 = shalt.err (!%p528_p10)
}
 0x1cb   :  { %334 = dma.vmem_to_hbm [thread:$0]  %s332_s23, 128, %s654_s6, [#allocation4]  }
 0x1cc   :  { %s540_s28 = scalar_lea.vmem %s342_s25, 128  ;;  %p545_p12 = scmp.lt.s32.totalorder %s342_s25, %s342_s25 }
 0x1cd   :  { %p541_p11 = scmp.ne.s32.totalorder %s342_s25, %s540_s28  ;;  %p546_p13 = scmp.lt.s32.totalorder %s540_s28, %s540_s28 }
 0x1cf   :  { %p547_p0 = por %p546_p13, %p545_p12 }
 0x1d1   :  { %p548_p1 = pnand %p547_p0, %p541_p11 }
 0x1d3   :  { %551 = shalt.err (!%p548_p1)
}
 0x1d4   :  { %344 = dma.vmem_to_hbm [thread:$0]  %s342_s25, 128, %s655_s7, [#allocation12]   ;;  %v403_v35 = vpop.f32.mrf.mxu1  ;;  %v423_v36 = vpop.f32.mrf.mxu0 }
 0x1d5   :  { %566 = dma.done.wait [#allocation4], 128  }
 0x1d6   :  { %567 = vsyncadd [#allocation4], 4294967168 }
 0x1d7   :  { %568 = dma.done.wait [#allocation12], 128  }
 0x1d8   :  { %569 = vsyncadd [#allocation12], 4294967168 }
 0x1d9   :  { %351 = vsyncpa [#allocation3], 1 }
 0x1da   :  { %352 = vsyncpa [#allocation6], 1 }
 0x1db   :  { %353 = vsyncpa [#allocation9], 1 }
 0x1dc   :  { %354 = vsyncpa [#allocation4], 1 }
 0x1dd   :  { %355 = vsyncpa [#allocation12], 1 }

</bundles_post_ra>
